<compile_context>
chip_gen: v7x
topology: tpu7x:2x2x1
jax: 0.10.0
libtpu: 0.0.40
codegen_flags: <defaults>
</compile_context>

<pallas_src>
import jax
import jax.numpy as jnp
from jax.experimental import pallas as pl
from jax.experimental.pallas import tpu as pltpu


def _attention_kernel(x_ref, wfc_ref, bfc_ref, wattn_ref, o_ref):
    # x_ref:     (Bt, S, D_in)  batch block of inputs
    # wfc_ref:   (D_in, H)      fc weight (pre-transposed for right-matmul)
    # bfc_ref:   (1, H)         fc bias
    # wattn_ref: (1, H)         attention weight row
    # o_ref:     (Bt, S, H)     weighted hidden layer block (reshaped to
    #                           (B, S*H) for free in the wrapper)
    Bt, S, D_in = x_ref.shape
    H = wfc_ref.shape[1]

    # One MXU matmul for the whole batch block: (Bt*S, D_in) @ (D_in, H).
    # NOTE: this merge/split of leading dims is layout-free only when S is a
    # multiple of 8 (sublane tiling preserved); otherwise it costs a relayout.
    inp = x_ref[...].reshape(Bt * S, D_in)
    x = jnp.dot(inp, wfc_ref[...],
                preferred_element_type=jnp.float32) + bfc_ref[...]   # (Bt*S, H)
    x3 = x.reshape(Bt, S, H)

    # Attention scores: VPU multiply + cross-lane reduce (avoids an N=1 MXU
    # matmul). b_attn omitted: softmax over S is shift invariant.
    t3 = jnp.tanh(x3)
    scores = jnp.sum(t3 * wattn_ref[...], axis=-1, keepdims=True)    # (Bt, S, 1)

    # Softmax over the sequence axis (PyTorch dim=1), per batch element.
    m = jnp.max(scores, axis=1, keepdims=True)                       # (Bt, 1, 1)
    e = jnp.exp(scores - m)                                          # (Bt, S, 1)
    denom = jnp.sum(e, axis=1, keepdims=True)                        # (Bt, 1, 1)
    attn_w = e * pl.reciprocal(denom, approx=False)                  # (Bt, S, 1)

    # Single full-block store (no per-seq-slot masked stores / lane shifts).
    o_ref[...] = attn_w * x3                                         # (Bt, S, H)


def _pick_block_batch(B_pad, S, target_rows=2048):
    """Pick batch block Bt for an already-padded batch B_pad (multiple of 8):
      * Bt divides B_pad and is a multiple of 8 (or == B_pad),
      * Bt*S <= target_rows (amortize per-step overhead while staying far
        below VMEM limits, incl. v7x's 64 MiB),
      * prefer an EVEN grid-step count >= 2 (balanced v7x dual-TC sharding),
        then any step count >= 2 (pipelining), then the largest legal block.
    """
    cands = [bt for bt in range(1, B_pad + 1)
             if B_pad % bt == 0 and (bt == B_pad or bt % 8 == 0)]
    good = [bt for bt in cands if bt * S <= target_rows] or [min(cands)]
    even = [bt for bt in good if (B_pad // bt) >= 2 and (B_pad // bt) % 2 == 0]
    multi = [bt for bt in good if (B_pad // bt) >= 2]
    if even:
        return max(even)
    if multi:
        return max(multi)
    return max(good)


def single_layer_attention(inputs, w_fc, b_fc, w_attn, b_attn):
    """inputs: (B, S, D_in); w_fc: (H, D_in); b_fc: (H,); w_attn: (1, H); b_attn: (1,)."""
    inputs = jnp.asarray(inputs, jnp.float32)
    B, S, D_in = inputs.shape
    H = w_fc.shape[0]

    # Pad batch to a multiple of 8 so a pipelined, multi-step grid with
    # x8-aligned blocks always exists (padded rows sliced off afterwards).
    B_pad = max(8, ((B + 7) // 8) * 8)
    if B_pad != B:
        inputs = jnp.pad(inputs, ((0, B_pad - B), (0, 0), (0, 0)))

    Bt = _pick_block_batch(B_pad, S)

    wfc_t = jnp.asarray(w_fc, jnp.float32).T                  # (D_in, H)
    bfc = jnp.asarray(b_fc, jnp.float32).reshape(1, H)        # (1, H)
    wattn = jnp.asarray(w_attn, jnp.float32).reshape(1, H)    # (1, H)
    # b_attn intentionally not passed: softmax(scores + c) == softmax(scores).

    out = pl.pallas_call(
        _attention_kernel,
        out_shape=jax.ShapeDtypeStruct((B_pad, S, H), jnp.float32),
        grid_spec=pltpu.PrefetchScalarGridSpec(
            num_scalar_prefetch=0,
            grid=(B_pad // Bt,),
            in_specs=[
                pl.BlockSpec((Bt, S, D_in), lambda b: (b, 0, 0)),
                pl.BlockSpec((D_in, H), lambda b: (0, 0)),   # fetched once
                pl.BlockSpec((1, H), lambda b: (0, 0)),      # fetched once
                pl.BlockSpec((1, H), lambda b: (0, 0)),      # fetched once
            ],
            out_specs=pl.BlockSpec((Bt, S, H), lambda b: (b, 0, 0)),
        ),
        compiler_params=pltpu.CompilerParams(
            dimension_semantics=("parallel",)),
    )(inputs, wfc_t, bfc, wattn)

    # Drop batch padding; the (B, S, H) -> (B, S*H) reshape is a free
    # metadata op on the contiguous HBM array (matches .view(B, -1)).
    return out[:B].reshape(B, S * H)


def _reference(inputs, w_fc, b_fc, w_attn, b_attn):
    x = jnp.einsum("bsd,hd->bsh", inputs, w_fc) + b_fc
    scores = jnp.einsum("bsh,oh->bso", jnp.tanh(x), w_attn) + b_attn
    attn = jax.nn.softmax(scores, axis=1)
    w = attn * x
    return w.reshape(w.shape[0], -1)


if __name__ == "__main__":
    B, S, D_in, H = 2, 8, 32, 32

    key = jax.random.PRNGKey(0)
    k_in, k_wfc, k_bfc, k_wat, k_bat = jax.random.split(key, 5)

    inputs = jax.random.normal(k_in, (B, S, D_in), dtype=jnp.float32)

    # Deterministic PyTorch-style init: U(-1/sqrt(fan_in), 1/sqrt(fan_in))
    lim_fc = 1.0 / (D_in ** 0.5)
    w_fc = jax.random.uniform(k_wfc, (H, D_in), jnp.float32, -lim_fc, lim_fc)
    b_fc = jax.random.uniform(k_bfc, (H,), jnp.float32, -lim_fc, lim_fc)
    lim_at = 1.0 / (H ** 0.5)
    w_attn = jax.random.uniform(k_wat, (1, H), jnp.float32, -lim_at, lim_at)
    b_attn = jax.random.uniform(k_bat, (1,), jnp.float32, -lim_at, lim_at)

    out = single_layer_attention(inputs, w_fc, b_fc, w_attn, b_attn)
    out = jax.block_until_ready(out)

    ref = _reference(inputs, w_fc, b_fc, w_attn, b_attn)
    assert out.shape == (B, S * H), out.shape
    assert jnp.allclose(out, ref, atol=1e-5, rtol=1e-5), \
        float(jnp.max(jnp.abs(out - ref)))

    print("KERNEL_OK")
</pallas_src>

<mosaic_0001>
module attributes {stable_mosaic.version = 11 : i64} {
  func.func @_attention_kernel(%arg0: i32, %arg1: memref<8x8x32xf32, #tpu.memory_space<vmem>>, %arg2: memref<32x32xf32, #tpu.memory_space<vmem>>, %arg3: memref<1x32xf32, #tpu.memory_space<vmem>>, %arg4: memref<1x32xf32, #tpu.memory_space<vmem>>, %arg5: memref<8x8x32xf32, #tpu.memory_space<vmem>>) attributes {dimension_semantics = [#tpu.dimension_semantics<parallel>], iteration_bounds = array<i64: 1>, scalar_prefetch = 0 : i64, scratch_operands = 0 : i64, tpu.core_type = #tpu.core_type<tc>, window_params = [{transform_indices = @transform_0, window_bounds = array<i64: 8, 8, 32>}, {pipeline_mode = #tpu.pipeline_mode<synchronous>, transform_indices = @transform_1, window_bounds = array<i64: 32, 32>}, {pipeline_mode = #tpu.pipeline_mode<synchronous>, transform_indices = @transform_2, window_bounds = array<i64: 1, 32>}, {pipeline_mode = #tpu.pipeline_mode<synchronous>, transform_indices = @transform_3, window_bounds = array<i64: 1, 32>}, {transform_indices = @transform_4, window_bounds = array<i64: 8, 8, 32>}]} {
    %c0 = arith.constant 0 : index
    %c0_0 = arith.constant 0 : index
    %c0_1 = arith.constant 0 : index
    %0 = vector.load %arg1[%c0, %c0_0, %c0_1] : memref<8x8x32xf32, #tpu.memory_space<vmem>>, vector<8x8x32xf32>
    %1 = vector.shape_cast %0 : vector<8x8x32xf32> to vector<64x32xf32>
    %c0_2 = arith.constant 0 : index
    %c0_3 = arith.constant 0 : index
    %2 = vector.load %arg2[%c0_2, %c0_3] : memref<32x32xf32, #tpu.memory_space<vmem>>, vector<32x32xf32>
    %cst = arith.constant dense<0.000000e+00> : vector<64x32xf32>
    %3 = tpu.matmul %1, %2, %cst {dimension_numbers = #tpu.dot_dimension_numbers<[1], [0], [0], [1], [0, 0, 1, 1], [], []>} : vector<64x32xf32>, vector<32x32xf32>, vector<64x32xf32> -> vector<64x32xf32>
    %c0_4 = arith.constant 0 : index
    %c0_5 = arith.constant 0 : index
    %4 = vector.load %arg3[%c0_4, %c0_5] : memref<1x32xf32, #tpu.memory_space<vmem>>, vector<1x32xf32>
    %5 = vector.broadcast %4 : vector<1x32xf32> to vector<64x32xf32>
    %6 = arith.addf %3, %5 : vector<64x32xf32>
    %7 = vector.shape_cast %6 : vector<64x32xf32> to vector<8x8x32xf32>
    %8 = math.tanh %7 : vector<8x8x32xf32>
    %c0_6 = arith.constant 0 : index
    %c0_7 = arith.constant 0 : index
    %9 = vector.load %arg4[%c0_6, %c0_7] : memref<1x32xf32, #tpu.memory_space<vmem>>, vector<1x32xf32>
    %10 = vector.shape_cast %9 : vector<1x32xf32> to vector<1x1x32xf32>
    %11 = vector.broadcast %10 : vector<1x1x32xf32> to vector<8x8x32xf32>
    %12 = arith.mulf %8, %11 : vector<8x8x32xf32>
    %cst_8 = arith.constant dense<0.000000e+00> : vector<8x8xf32>
    %13 = vector.multi_reduction <add>, %12, %cst_8 [2] : vector<8x8x32xf32> to vector<8x8xf32>
    %14 = vector.shape_cast %13 : vector<8x8xf32> to vector<8x8x1xf32>
    %cst_9 = arith.constant dense<0xFF800000> : vector<8x1xf32>
    %15 = vector.multi_reduction <maximumf>, %14, %cst_9 [1] : vector<8x8x1xf32> to vector<8x1xf32>
    %16 = vector.shape_cast %15 : vector<8x1xf32> to vector<8x1x1xf32>
    %17 = vector.broadcast %16 : vector<8x1x1xf32> to vector<8x8x1xf32>
    %18 = arith.subf %14, %17 : vector<8x8x1xf32>
    %19 = math.exp %18 : vector<8x8x1xf32>
    %cst_10 = arith.constant dense<0.000000e+00> : vector<8x1xf32>
    %20 = vector.multi_reduction <add>, %19, %cst_10 [1] : vector<8x8x1xf32> to vector<8x1xf32>
    %21 = vector.shape_cast %20 : vector<8x1xf32> to vector<8x1x1xf32>
    %22 = tpu.reciprocal %21 : vector<8x1x1xf32> -> vector<8x1x1xf32>
    %23 = vector.broadcast %22 : vector<8x1x1xf32> to vector<8x8x1xf32>
    %24 = arith.mulf %19, %23 : vector<8x8x1xf32>
    %25 = vector.broadcast %24 : vector<8x8x1xf32> to vector<8x8x32xf32>
    %26 = arith.mulf %25, %7 : vector<8x8x32xf32>
    %c0_11 = arith.constant 0 : index
    %c0_12 = arith.constant 0 : index
    %c0_13 = arith.constant 0 : index
    %27 = vector.load %arg5[%c0_11, %c0_12, %c0_13] : memref<8x8x32xf32, #tpu.memory_space<vmem>>, vector<8x8x32xf32>
    tpu.vector_store %arg5[%c0_11, %c0_12, %c0_13], %26 {strides = array<i32>} : memref<8x8x32xf32, #tpu.memory_space<vmem>>, vector<8x8x32xf32>,
    return
  }
  func.func @transform_0(%arg0: i32) -> (i32, i32, i32) {
    %c0_i32 = arith.constant 0 : i32
    %c0_i32_0 = arith.constant 0 : i32
    %c0_i32_1 = arith.constant 0 : i32
    return %arg0, %c0_i32, %c0_i32_0 : i32, i32, i32
  }
  func.func @transform_1(%arg0: i32) -> (i32, i32) {
    %c0_i32 = arith.constant 0 : i32
    %c0_i32_0 = arith.constant 0 : i32
    %c0_i32_1 = arith.constant 0 : i32
    return %c0_i32, %c0_i32_0 : i32, i32
  }
  func.func @transform_2(%arg0: i32) -> (i32, i32) {
    %c0_i32 = arith.constant 0 : i32
    %c0_i32_0 = arith.constant 0 : i32
    %c0_i32_1 = arith.constant 0 : i32
    return %c0_i32, %c0_i32_0 : i32, i32
  }
  func.func @transform_3(%arg0: i32) -> (i32, i32) {
    %c0_i32 = arith.constant 0 : i32
    %c0_i32_0 = arith.constant 0 : i32
    %c0_i32_1 = arith.constant 0 : i32
    return %c0_i32, %c0_i32_0 : i32, i32
  }
  func.func @transform_4(%arg0: i32) -> (i32, i32, i32) {
    %c0_i32 = arith.constant 0 : i32
    %c0_i32_0 = arith.constant 0 : i32
    %c0_i32_1 = arith.constant 0 : i32
    return %arg0, %c0_i32, %c0_i32_0 : i32, i32, i32
  }
}

</mosaic_0001>

<bundles_post_ra>
// kernel: tpu_custom_call.1
= control target key start
LH: loop header
LB: loop body
LE: loop exit
PB: predicated region body
PF: predicated region fallthrough
CT: control target
= control target key end

     0   :  { %9 = vsyncpa [#allocation3], 0  ;;  %s758_s0 = inlined_call_operand.hbm [shape: f32[8,8,32], index: 0, kind: input, shape index: {}]   ;;  %s759_s1 = inlined_call_operand.hbm [shape: f32[32,32], index: 1, kind: input, shape index: {}]   ;;  %s760_s2 = inlined_call_operand.vmem [shape: f32[1,32], index: 2, kind: input, shape index: {}]   ;;  %s761_s3 = inlined_call_operand.vmem [shape: f32[1,32], index: 3, kind: input, shape index: {}]   ;;  %s762_s4 = inlined_call_operand.hbm [shape: f32[8,8,32], index: 4, kind: output, shape index: {}]  }
   0x1   :  { %10 = vsyncpa [#allocation6], 0 }
   0x2   :  { %11 = vsyncpa [#allocation4], 0  ;;  %s591_s15 = smov [#allocation2]   ;;  %s519_s19 = scalar_lea.hbm %s758_s0, 1024 }
   0x3   :  { %s17_s16 = sshll.u32 %s591_s15, 4  ;;  %p520_p0 = scmp.ne.s32.totalorder %s758_s0, %s519_s19  ;;  %s18_s16 = int_to_ptr.vmem [resolvable:$true] %s17_s16 }
   0x4   :  { %p523_p1 = scmp.lt.u32.totalorder %s519_s19, %s758_s0 }
   0x6   :  { %p525_p2 = pnand %p523_p1, %p520_p0 }
   0x8   :  { %528 = shalt.err (!%p525_p2)
}
   0x9   :  { %s529_s24 = scalar_lea.vmem %s18_s16, 1024  ;;  %p534_p4 = scmp.lt.s32.totalorder %s18_s16, %s18_s16 }
   0xa   :  { %p530_p3 = scmp.ne.s32.totalorder %s18_s16, %s529_s24  ;;  %p535_p5 = scmp.lt.s32.totalorder %s529_s24, %s529_s24 }
   0xc   :  { %p536_p6 = por %p535_p5, %p534_p4 }
   0xe   :  { %p537_p7 = pnand %p536_p6, %p530_p3 }
  0x10   :  { %540 = shalt.err (!%p537_p7)
}
  0x11   :  { %s592_s25 = smov 128   ;;  %s593_s26 = smov 8  }
  0x12   :  { %23 = dma.hbm_to_vmem [thread:$0]  %s758_s0, 1024, %s18_s16, [#allocation3], %s592_s25, %s592_s25, %s593_s26  }
  0x13   :  { %s594_s29 = smov [#allocation5]   ;;  %s541_s7 = scalar_lea.hbm %s759_s1, 512 }
  0x14   :  { %s29_s30 = sshll.u32 %s594_s29, 4  ;;  %p542_p8 = scmp.ne.s32.totalorder %s759_s1, %s541_s7  ;;  %s30_s30 = int_to_ptr.vmem [resolvable:$true] %s29_s30 }
  0x15   :  { %p545_p9 = scmp.lt.u32.totalorder %s541_s7, %s759_s1 }
  0x17   :  { %p547_p10 = pnand %p545_p9, %p542_p8 }
  0x19   :  { %550 = shalt.err (!%p547_p10)
}
  0x1a   :  { %s551_s12 = scalar_lea.vmem %s30_s30, 512  ;;  %p556_p12 = scmp.lt.s32.totalorder %s30_s30, %s30_s30 }
  0x1b   :  { %p552_p11 = scmp.ne.s32.totalorder %s30_s30, %s551_s12  ;;  %p557_p13 = scmp.lt.s32.totalorder %s551_s12, %s551_s12 }
  0x1d   :  { %p558_p0 = por %p557_p13, %p556_p12 }
  0x1f   :  { %p559_p1 = pnand %p558_p0, %p552_p11 }
  0x21   :  { %562 = shalt.err (!%p559_p1)
}
  0x22   :  { %35 = dma.hbm_to_vmem [thread:$0]  %s759_s1, 512, %s30_s30, [#allocation6], %s592_s25, %s592_s25, %s593_s26  }
  0x23   :  { %585 = dma.done.wait [#allocation3], 1024  }
  0x24   :  { %586 = vsyncadd [#allocation3], 4294966272 }
  0x25   :  { %587 = dma.done.wait [#allocation6], 512  }
  0x26   :  { %588 = vsyncadd [#allocation6], 4294966784  ;;  %vm65_vm0 = vcmask 261120   ;;  %v54_v0 = vld [vmem:[#allocation5] sm:$0xff]  ;;  %v55_v1 = vld [vmem:[#allocation5 + $0x8] sm:$0xff] }
  0x27   :  { %v56_v2 = vld [vmem:[#allocation5 + $0x10] sm:$0xff]  ;;  %v454_v3 = vpack.c.bf16 %v55_v1, %v54_v0  ;;  %v57_v4 = vld [vmem:[#allocation5 + $0x18] sm:$0xff]  ;;  %v46_v5 = vld [vmem:[#allocation2] sm:$0xff] }
  0x28   :  { %v50_v6 = vld [vmem:[#allocation2 + $0x20] sm:$0xff]  ;;  %v458_v7 = vpack.c.bf16 %v57_v4, %v56_v2  ;;  %442 = vmatprep.mubr.msk.f32.mxu0 %vm65_vm0, %v46_v5  ;;  %v47_v8 = vld [vmem:[#allocation2 + $0x8] sm:$0xff]  ;;  %v48_v10 = vld [vmem:[#allocation2 + $0x10] sm:$0xff] }
  0x29   :  { %448 = vmatprep.mubr.msk.f32.mxu1 %vm65_vm0, %v50_v6  ;;  %455 = vmatprep.subr.bf16.mxu0 %v454_v3  ;;  %v51_v9 = vld [vmem:[#allocation2 + $0x28] sm:$0xff]  ;;  %v52_v11 = vld [vmem:[#allocation2 + $0x30] sm:$0xff]  ;;  %v49_v12 = vld [vmem:[#allocation2 + $0x18] sm:$0xff] }
  0x2a   :  { %462 = vmatprep.subr.bf16.mxu1 %v454_v3  ;;  %457 = vmatpush3.bf16.msra.mxu0 %v454_v3  ;;  %v53_v13 = vld [vmem:[#allocation2 + $0x38] sm:$0xff]  ;;  %v412_v14 = vld [vmem:[%s760_s2] ss:$0 sm:$0xff] }
  0x2b   :  { %464 = vmatpush3.bf16.msra.mxu1 %v454_v3  ;;  %459 = vmatprep.subr.bf16.mxu0 %v458_v7  ;;  %v421_v31 = vld [vmem:[%s761_s3] ss:$0 sm:$0xff]  ;;  %s595_s3 = smov [#allocation7]  }
  0x2c   :  { %463 = vmatprep.subr.bf16.mxu1 %v458_v7  ;;  %s399_s16 = sshll.u32 %s595_s3, 4  ;;  %s400_s16 = int_to_ptr.vmem [resolvable:$true] %s399_s16 }
  0x2d   :  { %s563_s17 = scalar_lea.vmem %s400_s16, 1024  ;;  %p568_p3 = scmp.lt.s32.totalorder %s400_s16, %s400_s16 }
  0x2e   :  { %461 = vmatpush3.bf16.msra.mxu0 %v458_v7  ;;  %p564_p2 = scmp.ne.s32.totalorder %s400_s16, %s563_s17  ;;  %p569_p4 = scmp.lt.s32.totalorder %s563_s17, %s563_s17 }
  0x2f   :  { %465 = vmatpush3.bf16.msra.mxu1 %v458_v7 }
  0x30   :  { %p570_p5 = por %p569_p4, %p568_p3 }
  0x31   :  { %443 = vmatmul.mubr.msk.f32.vlgmr.msra.gmra.mrb[0].mxu0 %vm65_vm0, %v47_v8 }
  0x32   :  { %449 = vmatmul.mubr.msk.f32.vlgmr.msra.gmra.mrb[0].mxu1 %vm65_vm0, %v51_v9  ;;  %445 = vmatprep.mubr.msk.f32.mxu0 %vm65_vm0, %v48_v10  ;;  %p571_p6 = pnand %p570_p5, %p564_p2 }
  0x33   :  { %451 = vmatprep.mubr.msk.f32.mxu1 %vm65_vm0, %v52_v11 }
  0x35   :  { %446 = vmatmul.mubr.msk.f32.gmra.mrb[2].mxu0 %vm65_vm0, %v49_v12 }
  0x36   :  { %452 = vmatmul.mubr.msk.f32.gmra.mrb[2].mxu1 %vm65_vm0, %v53_v13 }
 0x104   :  { %v444_v15 = vpop.f32.mrb[0].mxu0 }
 0x105   :  { %v450_v16 = vpop.f32.mrb[0].mxu1  ;;  %v662_v17 = vadd.f32 %v444_v15, %v412_v14  ;;  %v156_v19 = vpop.f32.mrb[1].mxu0 }
 0x106   :  { %v664_v18 = vadd.f32 %v450_v16, %v412_v14  ;;  %v176_v20 = vpop.f32.mrb[1].mxu1  ;;  %v666_v21 = vadd.f32 %v412_v14, %v156_v19 }
 0x107   :  { %v668_v22 = vadd.f32 %v412_v14, %v176_v20  ;;  %471 = vtanh.f32 %v662_v17 }
 0x108   :  { %473 = vtanh.f32 %v664_v18  ;;  %v447_v23 = vpop.f32.mrb[2].mxu0 }
 0x109   :  { %v453_v24 = vpop.f32.mrb[2].mxu1  ;;  %475 = vtanh.f32 %v666_v21  ;;  %v673_v25 = vadd.f32 %v447_v23, %v412_v14  ;;  %v166_v26 = vpop.f32.mrb[3].mxu0 }
 0x10a   :  { %v675_v27 = vadd.f32 %v453_v24, %v412_v14  ;;  %v186_v28 = vpop.f32.mrb[3].mxu1  ;;  %477 = vtanh.f32 %v668_v22  ;;  %v678_v29 = vadd.f32 %v412_v14, %v166_v26 }
 0x10b   :  { %v680_v30 = vadd.f32 %v412_v14, %v186_v28  ;;  %479 = vtanh.f32 %v673_v25 }
 0x10c   :  { %481 = vtanh.f32 %v678_v29 }
 0x10d   :  { %483 = vtanh.f32 %v675_v27 }
 0x10e   :  { %485 = vtanh.f32 %v680_v30 }
 0x111   :  { %v472_v32 = vpop.eup %471 }
 0x112   :  { %v474_v33 = vpop.eup %473  ;;  %v211_v34 = vmul.f32 %v472_v32, %v421_v31 }
 0x113   :  { %v476_v35 = vpop.eup %475  ;;  %v215_v36 = vmul.f32 %v474_v33, %v421_v31 }
 0x114   :  { %v478_v37 = vpop.eup %477  ;;  %v221_v38 = vsel %vm65_vm0, %v211_v34, 0.0  ;;  %v210_v39 = vmul.f32 %v476_v35, %v421_v31 }
 0x115   :  { %v480_v40 = vpop.eup %479  ;;  %v233_v41 = vsel %vm65_vm0, %v215_v36, 0.0  ;;  %222 = vadd.xlane.f32.xlu0 %v221_v38  ;;  %v214_v48 = vmul.f32 %v478_v37, %v421_v31 }
 0x116   :  { %v482_v42 = vpop.eup %481  ;;  %234 = vadd.xlane.f32.xlu1 %v233_v41  ;;  %v213_v43 = vmul.f32 %v480_v40, %v421_v31  ;;  %v218_v47 = vsel %vm65_vm0, %v210_v39, 0.0 }
 0x117   :  { %v484_v44 = vpop.eup %483  ;;  %v212_v49 = vmul.f32 %v482_v42, %v421_v31  ;;  %v230_v52 = vsel %vm65_vm0, %v214_v48, 0.0 }
 0x118   :  { %v486_v45 = vpop.eup %485  ;;  %v227_v46 = vsel %vm65_vm0, %v213_v43, 0.0  ;;  %v217_v51 = vmul.f32 %v484_v44, %v421_v31 }
 0x119   :  { %219 = vadd.xlane.f32.xlu0 %v218_v47  ;;  %v216_v50 = vmul.f32 %v486_v45, %v421_v31  ;;  %v224_v53 = vsel %vm65_vm0, %v212_v49, 0.0 }
 0x11a   :  { %228 = vadd.xlane.f32.xlu1 %v227_v46  ;;  %v239_v55 = vsel %vm65_vm0, %v217_v51, 0.0 }
 0x11b   :  { %v236_v54 = vsel %vm65_vm0, %v216_v50, 0.0 }
 0x11d   :  { %231 = vadd.xlane.f32.xlu0 %v230_v52 }
 0x11e   :  { %225 = vadd.xlane.f32.xlu1 %v224_v53 }
 0x121   :  { %237 = vadd.xlane.f32.xlu0 %v236_v54 }
 0x122   :  { %240 = vadd.xlane.f32.xlu1 %v239_v55 }
 0x1a2   :  { %v223_v56 = vpop.xlane.xlu0 %222 }
 0x1a3   :  { %v235_v57 = vpop.xlane.xlu1 %234  ;;  %v248_v58 = vrot.slane %v223_v56, 4 }
 0x1a4   :  { %v272_v59 = vrot.slane %v235_v57, 4 }
 0x1a5   :  { %v249_v60 = vmax.f32 %v223_v56, %v248_v58 }
 0x1a6   :  { %v273_v61 = vmax.f32 %v235_v57, %v272_v59  ;;  %v220_v62 = vpop.xlane.xlu0 %219 }
 0x1a7   :  { %v250_v63 = vrot.slane %v249_v60, 2  ;;  %v229_v0 = vpop.xlane.xlu1 %228  ;;  %v242_v1 = vrot.slane %v220_v62, 4 }
 0x1a8   :  { %v274_v2 = vrot.slane %v273_v61, 2  ;;  %v260_v3 = vrot.slane %v229_v0, 4 }
 0x1a9   :  { %v251_v4 = vmax.f32 %v249_v60, %v250_v63  ;;  %v243_v5 = vmax.f32 %v220_v62, %v242_v1 }
 0x1aa   :  { %v275_v6 = vmax.f32 %v273_v61, %v274_v2  ;;  %v261_v7 = vmax.f32 %v229_v0, %v260_v3  ;;  %v232_v8 = vpop.xlane.xlu0 %231 }
 0x1ab   :  { %v252_v9 = vrot.slane %v251_v4, 1  ;;  %v244_v10 = vrot.slane %v243_v5, 2  ;;  %v226_v11 = vpop.xlane.xlu1 %225  ;;  %v266_v12 = vrot.slane %v232_v8, 4 }
 0x1ac   :  { %v276_v13 = vrot.slane %v275_v6, 1  ;;  %v262_v14 = vrot.slane %v261_v7, 2  ;;  %v254_v15 = vrot.slane %v226_v11, 4 }
 0x1ad   :  { %v253_v16 = vmax.f32 %v251_v4, %v252_v9  ;;  %v245_v19 = vmax.f32 %v243_v5, %v244_v10  ;;  %v267_v20 = vmax.f32 %v232_v8, %v266_v12 }
 0x1ae   :  { %v277_v23 = vmax.f32 %v275_v6, %v276_v13  ;;  %v263_v24 = vmax.f32 %v261_v7, %v262_v14  ;;  %v255_v26 = vmax.f32 %v226_v11, %v254_v15  ;;  %v238_v28 = vpop.xlane.xlu0 %237 }
 0x1af   :  { %v291_v31 = vsub.f32 %v223_v56, %v253_v16  ;;  %v246_v32 = vrot.slane %v245_v19, 1  ;;  %v268_v33 = vrot.slane %v267_v20, 2  ;;  %v241_v34 = vpop.xlane.xlu1 %240  ;;  %v278_v35 = vrot.slane %v238_v28, 4 }
 0x1b0   :  { %v295_v36 = vsub.f32 %v235_v57, %v277_v23  ;;  %v264_v37 = vrot.slane %v263_v24, 1  ;;  %v256_v38 = vrot.slane %v255_v26, 2  ;;  %v284_v39 = vrot.slane %v241_v34, 4 }
 0x1b1   :  { %v300_v40 = vmul.f32 1.442695, %v291_v31  ;;  %v247_v41 = vmax.f32 %v245_v19, %v246_v32  ;;  %v269_v42 = vmax.f32 %v267_v20, %v268_v33  ;;  %v279_v43 = vmax.f32 %v238_v28, %v278_v35 }
 0x1b2   :  { %v308_v44 = vmul.f32 1.442695, %v295_v36  ;;  %v265_v45 = vmax.f32 %v263_v24, %v264_v37  ;;  %v257_v46 = vmax.f32 %v255_v26, %v256_v38  ;;  %v285_v47 = vmax.f32 %v241_v34, %v284_v39 }
 0x1b3   :  { %487 = vpow2.f32 %v300_v40  ;;  %v290_v48 = vsub.f32 %v220_v62, %v247_v41  ;;  %v270_v49 = vrot.slane %v269_v42, 1  ;;  %v280_v50 = vrot.slane %v279_v43, 2 }
 0x1b4   :  { %489 = vpow2.f32 %v308_v44  ;;  %v293_v51 = vsub.f32 %v229_v0, %v265_v45  ;;  %v258_v52 = vrot.slane %v257_v46, 1  ;;  %v286_v53 = vrot.slane %v285_v47, 2 }
 0x1b5   :  { %v298_v54 = vmul.f32 1.442695, %v290_v48  ;;  %v271_v55 = vmax.f32 %v269_v42, %v270_v49  ;;  %v281_v56 = vmax.f32 %v279_v43, %v280_v50 }
 0x1b6   :  { %v304_v57 = vmul.f32 1.442695, %v293_v51  ;;  %v259_v58 = vmax.f32 %v257_v46, %v258_v52  ;;  %v287_v59 = vmax.f32 %v285_v47, %v286_v53 }
 0x1b7   :  { %491 = vpow2.f32 %v298_v54  ;;  %v294_v60 = vsub.f32 %v232_v8, %v271_v55  ;;  %v282_v61 = vrot.slane %v281_v56, 1 }
 0x1b8   :  { %493 = vpow2.f32 %v304_v57  ;;  %v292_v63 = vsub.f32 %v226_v11, %v259_v58  ;;  %v288_v1 = vrot.slane %v287_v59, 1 }
 0x1b9   :  { %v306_v2 = vmul.f32 1.442695, %v294_v60  ;;  %v283_v62 = vmax.f32 %v281_v56, %v282_v61 }
 0x1ba   :  { %v302_v3 = vmul.f32 1.442695, %v292_v63  ;;  %v289_v4 = vmax.f32 %v287_v59, %v288_v1 }
 0x1bb   :  { %495 = vpow2.f32 %v306_v2  ;;  %v296_v0 = vsub.f32 %v238_v28, %v283_v62 }
 0x1bc   :  { %497 = vpow2.f32 %v302_v3  ;;  %v297_v5 = vsub.f32 %v241_v34, %v289_v4 }
 0x1bd   :  { %v697_v6 = vpop.eup %487  ;;  %v310_v7 = vmul.f32 1.442695, %v296_v0 }
 0x1be   :  { %v699_v9 = vpop.eup %489  ;;  %v320_v10 = vrot.slane %v697_v6, 4  ;;  %v312_v8 = vmul.f32 1.442695, %v297_v5 }
 0x1bf   :  { %v344_v12 = vrot.slane %v699_v9, 4  ;;  %499 = vpow2.f32 %v310_v7 }
 0x1c0   :  { %v321_v11 = vadd.f32 %v697_v6, %v320_v10  ;;  %501 = vpow2.f32 %v312_v8 }
 0x1c1   :  { %v704_v13 = vpop.eup %491  ;;  %v345_v14 = vadd.f32 %v699_v9, %v344_v12 }
 0x1c2   :  { %v707_v15 = vpop.eup %493  ;;  %v322_v16 = vrot.slane %v321_v11, 2  ;;  %v314_v19 = vrot.slane %v704_v13, 4 }
 0x1c3   :  { %v346_v20 = vrot.slane %v345_v14, 2  ;;  %v332_v23 = vrot.slane %v707_v15, 4 }
 0x1c4   :  { %v323_v24 = vadd.f32 %v322_v16, %v321_v11  ;;  %v315_v26 = vadd.f32 %v704_v13, %v314_v19 }
 0x1c5   :  { %v712_v28 = vpop.eup %495  ;;  %v347_v31 = vadd.f32 %v346_v20, %v345_v14  ;;  %v333_v32 = vadd.f32 %v707_v15, %v332_v23 }
 0x1c6   :  { %v715_v33 = vpop.eup %497  ;;  %v324_v34 = vrot.slane %v323_v24, 1  ;;  %v316_v35 = vrot.slane %v315_v26, 2  ;;  %v338_v36 = vrot.slane %v712_v28, 4 }
 0x1c7   :  { %v348_v37 = vrot.slane %v347_v31, 1  ;;  %v334_v38 = vrot.slane %v333_v32, 2  ;;  %v326_v39 = vrot.slane %v715_v33, 4 }
 0x1c8   :  { %v325_v40 = vadd.f32 %v324_v34, %v323_v24  ;;  %v317_v41 = vadd.f32 %v316_v35, %v315_v26  ;;  %v339_v42 = vadd.f32 %v712_v28, %v338_v36 }
 0x1c9   :  { %v500_v43 = vpop.eup %499  ;;  %v349_v44 = vadd.f32 %v348_v37, %v347_v31  ;;  %v335_v45 = vadd.f32 %v334_v38, %v333_v32  ;;  %v327_v46 = vadd.f32 %v715_v33, %v326_v39 }
 0x1ca   :  { %v502_v47 = vpop.eup %501  ;;  %503 = vrcp.f32 %v325_v40  ;;  %v318_v48 = vrot.slane %v317_v41, 1  ;;  %v340_v49 = vrot.slane %v339_v42, 2  ;;  %v350_v50 = vrot.slane %v500_v43, 4 }
 0x1cb   :  { %505 = vrcp.f32 %v349_v44  ;;  %v336_v51 = vrot.slane %v335_v45, 1  ;;  %v328_v52 = vrot.slane %v327_v46, 2  ;;  %v356_v53 = vrot.slane %v502_v47, 4 }
 0x1cc   :  { %v319_v54 = vadd.f32 %v318_v48, %v317_v41  ;;  %v341_v55 = vadd.f32 %v340_v49, %v339_v42  ;;  %v351_v56 = vadd.f32 %v500_v43, %v350_v50 }
 0x1cd   :  { %v337_v57 = vadd.f32 %v336_v51, %v335_v45  ;;  %v329_v58 = vadd.f32 %v328_v52, %v327_v46  ;;  %v357_v59 = vadd.f32 %v502_v47, %v356_v53 }
 0x1ce   :  { %507 = vrcp.f32 %v319_v54  ;;  %v342_v60 = vrot.slane %v341_v55, 1  ;;  %v352_v61 = vrot.slane %v351_v56, 2 }
 0x1cf   :  { %509 = vrcp.f32 %v337_v57  ;;  %v330_v63 = vrot.slane %v329_v58, 1  ;;  %v358_v1 = vrot.slane %v357_v59, 2 }
 0x1d0   :  { %v343_v2 = vadd.f32 %v342_v60, %v341_v55  ;;  %v353_v62 = vadd.f32 %v352_v61, %v351_v56 }
 0x1d1   :  { %v331_v3 = vadd.f32 %v330_v63, %v329_v58  ;;  %v359_v4 = vadd.f32 %v358_v1, %v357_v59 }
 0x1d2   :  { %511 = vrcp.f32 %v343_v2  ;;  %v354_v0 = vrot.slane %v353_v62, 1 }
 0x1d3   :  { %513 = vrcp.f32 %v331_v3  ;;  %v360_v5 = vrot.slane %v359_v4, 1 }
 0x1d4   :  { %v504_v7 = vpop.eup %503  ;;  %v355_v10 = vadd.f32 %v354_v0, %v353_v62 }
 0x1d5   :  { %v506_v8 = vpop.eup %505  ;;  %v371_v12 = vmul.f32 %v504_v7, %v697_v6  ;;  %v361_v11 = vadd.f32 %v360_v5, %v359_v4 }
 0x1d6   :  { %v375_v14 = vmul.f32 %v506_v8, %v699_v9  ;;  %515 = vrcp.f32 %v355_v10 }
 0x1d7   :  { %517 = vrcp.f32 %v361_v11  ;;  %v379_v16 = vmul.f32 %v371_v12, %v662_v17 }
 0x1d8   :  { %v508_v19 = vpop.eup %507  ;;  %v383_v20 = vmul.f32 %v375_v14, %v664_v18 }
 0x1d9   :  { %v510_v23 = vpop.eup %509  ;;  %v370_v24 = vmul.f32 %v508_v19, %v704_v13  ;;  %387 = vst.msk [vmem:[#allocation7 + $0x8] sm:$0xff] %vm65_vm0, %v379_v16 }
 0x1da   :  { %v373_v26 = vmul.f32 %v510_v23, %v707_v15  ;;  %391 = vst.msk [vmem:[#allocation7 + $0x28] sm:$0xff] %vm65_vm0, %v383_v20 }
 0x1db   :  { %v378_v6 = vmul.f32 %v370_v24, %v666_v21 }
 0x1dc   :  { %v512_v31 = vpop.eup %511  ;;  %v381_v9 = vmul.f32 %v373_v26, %v673_v25 }
 0x1dd   :  { %v514_v32 = vpop.eup %513  ;;  %v374_v17 = vmul.f32 %v512_v31, %v712_v28  ;;  %386 = vst.msk [vmem:[#allocation7] sm:$0xff] %vm65_vm0, %v378_v6 }
 0x1de   :  { %v372_v18 = vmul.f32 %v514_v32, %v715_v33  ;;  %389 = vst.msk [vmem:[#allocation7 + $0x18] sm:$0xff] %vm65_vm0, %v381_v9 }
 0x1df   :  { %v382_v13 = vmul.f32 %v374_v17, %v668_v22 }
 0x1e0   :  { %v516_v34 = vpop.eup %515  ;;  %v380_v15 = vmul.f32 %v372_v18, %v678_v29 }
 0x1e1   :  { %v518_v35 = vpop.eup %517  ;;  %v376_v36 = vmul.f32 %v516_v34, %v500_v43  ;;  %390 = vst.msk [vmem:[#allocation7 + $0x20] sm:$0xff] %vm65_vm0, %v382_v13 }
 0x1e2   :  { %v377_v21 = vmul.f32 %v518_v35, %v502_v47  ;;  %388 = vst.msk [vmem:[#allocation7 + $0x10] sm:$0xff] %vm65_vm0, %v380_v15 }
 0x1e3   :  { %v384_v25 = vmul.f32 %v376_v36, %v680_v30 }
 0x1e4   :  { %v385_v28 = vmul.f32 %v377_v21, %v675_v27 }
 0x1e5   :  { %392 = vst.msk [vmem:[#allocation7 + $0x30] sm:$0xff] %vm65_vm0, %v384_v25 }
 0x1e6   :  { %393 = vst.msk [vmem:[#allocation7 + $0x38] sm:$0xff] %vm65_vm0, %v385_v28 }
 0x1e7   :  { %574 = shalt.err (!%p571_p6)
}
 0x1e8   :  { %s575_s20 = scalar_lea.hbm %s762_s4, 1024 }
 0x1e9   :  { %p576_p7 = scmp.ne.s32.totalorder %s762_s4, %s575_s20  ;;  %p579_p8 = scmp.lt.u32.totalorder %s575_s20, %s762_s4 }
 0x1eb   :  { %p581_p9 = pnand %p579_p8, %p576_p7 }
 0x1ed   :  { %584 = shalt.err (!%p581_p9)
}
 0x1ee   :  { %405 = dma.vmem_to_hbm [thread:$0]  %s400_s16, 1024, %s762_s4, [#allocation4], %s592_s25, %s592_s25, %s593_s26  }
 0x1ef   :  { %589 = dma.done.wait [#allocation4], 1024  }
 0x1f0   :  { %590 = vsyncadd [#allocation4], 4294966272 }
 0x1f1   :  { %409 = vsyncpa [#allocation3], 1 }
 0x1f2   :  { %410 = vsyncpa [#allocation6], 1 }
 0x1f3   :  { %411 = vsyncpa [#allocation4], 1 }

</bundles_post_ra>
